<compile_context>
chip_gen: v7x
topology: tpu7x:2x2x1
jax: 0.10.0
libtpu: 0.0.40
codegen_flags: <defaults>
</compile_context>

<pallas_src>
import jax
import jax.numpy as jnp
from jax.experimental import pallas as pl
from jax.experimental.pallas import tpu as pltpu

_LANE = 128


def valuenet_kernel(xt_ref, w1_ref, b1_ref, w2_ref, b2_ref, o_ref):
    # xt_ref : (S, bt)  f32   x^T tile, batch on lanes (lane-dense)
    # w1_ref : (H, S)   f32   fc1 weight in PyTorch (out, in) layout
    # b1_ref : (H, 1)   f32
    # w2_ref : (1, H)   f32   fc2 weight row
    # b2_ref : (1, 1)   f32   SMEM scalar
    # o_ref  : (1, bt)  f32   lane-dense output row
    xt = xt_ref[...]

    # fc1 on the MXU: (H, S) @ (S, bt) -> (H, bt).  K = S sits on xt's sublane
    # axis, i.e. the MXU's natural orientation; no relayout of x is needed.
    h = jnp.dot(w1_ref[...], xt, preferred_element_type=jnp.float32)
    h = jnp.maximum(h + b1_ref[...], 0.0)            # bias + ReLU, (H, bt)

    # fc2 on the MXU: (1, H) @ (H, bt) -> (1, bt).  Contraction is over h's
    # sublane axis, so the result is already the lane-dense output row.
    o = jnp.dot(w2_ref[...], h, preferred_element_type=jnp.float32)
    o_ref[...] = (o + b2_ref[0, 0]).astype(o_ref.dtype)


def value_net_forward(x, w1, b1, w2, b2, *, batch_tile=8192):
    """Fused ValueNet forward.

    PyTorch nn.Linear layouts:
      x: (B, S)   w1: (H, S)   b1: (H,)   w2: (1, H)   b2: (1,)
    Returns: (B, 1)
    """
    B, S = x.shape
    H = w1.shape[0]

    # ---- tile selection --------------------------------------------------
    # One tile when B is small (padded to a 128-lane multiple so the output
    # store stays full-width); otherwise lane-aligned tiles of `batch_tile`
    # rows (keep it a multiple of 512 to fill whole MXU result tiles on
    # v6e/v7x).  Per-tile VMEM is dominated by h = H * bt * 4 bytes.
    if B <= batch_tile:
        bt = max(_LANE, pl.cdiv(B, _LANE) * _LANE)
        num_tiles = 1
    else:
        bt = max(_LANE, (batch_tile // _LANE) * _LANE)
        num_tiles = pl.cdiv(B, bt)
    B_pad = num_tiles * bt

    # ---- operand prep (layout plumbing outside the kernel) ----------------
    xt = x.astype(jnp.float32).T                       # (S, B)
    w1_hs = w1.astype(jnp.float32)                     # (H, S)
    b1_col = b1.astype(jnp.float32).reshape(H, 1)      # (H, 1)
    w2_row = w2.astype(jnp.float32).reshape(1, H)      # (1, H)
    b2_sc = b2.astype(jnp.float32).reshape(1, 1)       # SMEM scalar

    # VMEM budget: h intermediate + double-buffered x/out tiles + weights.
    vmem_need = 4 * (H * bt + 2 * S * bt + 2 * bt + H * S + 2 * H + 1)
    vmem_limit = int(min(max(2 * vmem_need, 16 * 1024 * 1024),
                         64 * 1024 * 1024))

    cost = pl.CostEstimate(
        flops=2 * B_pad * S * H + 2 * B_pad * H,
        transcendentals=0,
        bytes_accessed=B * S * 4 + B_pad * 4 + (H * S + 2 * H + 1) * 4,
    )

    out_row = pl.pallas_call(
        valuenet_kernel,
        out_shape=jax.ShapeDtypeStruct((1, B_pad), jnp.float32),
        grid_spec=pltpu.PrefetchScalarGridSpec(
            num_scalar_prefetch=0,
            grid=(num_tiles,),
            in_specs=[
                # x^T tile streams.  A ragged tail tile (B % bt != 0) is
                # handled by Pallas block padding; padded lanes never mix with
                # real ones (no cross-row reduction).  Only add
                # pipeline_mode=pl.Buffered(3) here if a profile shows the x
                # DMA exposed after enlarging bt.
                pl.BlockSpec((S, bt), lambda i: (0, i)),
                # Weights/biases: constant index_maps -> VMEM-resident across
                # all grid steps (no extra buffering wanted or needed).
                pl.BlockSpec((H, S), lambda i: (0, 0)),
                pl.BlockSpec((H, 1), lambda i: (0, 0)),
                pl.BlockSpec((1, H), lambda i: (0, 0)),
                # b2 as an SMEM scalar (avoids a padded (1,1) VMEM tile and a
                # cross-lane broadcast).
                pl.BlockSpec(memory_space=pltpu.MemorySpace.SMEM),
            ],
            out_specs=pl.BlockSpec((1, bt), lambda i: (0, i)),  # lane-dense
        ),
        compiler_params=pltpu.CompilerParams(
            # Independent batch axis.  On v7x, pltpu.CORE_PARALLEL can be used
            # here to shard the axis across both TensorCores.
            dimension_semantics=("parallel",),
            vmem_limit_bytes=vmem_limit,
        ),
        cost_estimate=cost,
    )(xt, w1_hs, b1_col, w2_row, b2_sc)

    # Row-major (1, B_pad) has the same linear layout as (B_pad, 1); slicing
    # drops the lane-padding rows.
    return out_row.reshape(B_pad, 1)[:B]


def init_valuenet_params(key, state_dim, hidden_dim=128):
    """torch.nn.Linear-style init and layout: weight (out, in), bias (out,)."""
    k1, k2, k3, k4 = jax.random.split(key, 4)
    bound1 = float(state_dim) ** -0.5
    bound2 = float(hidden_dim) ** -0.5
    w1 = jax.random.uniform(k1, (hidden_dim, state_dim), jnp.float32, -bound1, bound1)
    b1 = jax.random.uniform(k2, (hidden_dim,), jnp.float32, -bound1, bound1)
    w2 = jax.random.uniform(k3, (1, hidden_dim), jnp.float32, -bound2, bound2)
    b2 = jax.random.uniform(k4, (1,), jnp.float32, -bound2, bound2)
    return w1, b1, w2, b2


if __name__ == "__main__":
    import numpy as np

    # MountainCarContinuous: state_dim = 2, hidden_dim = 128.
    state_dim, hidden_dim = 2, 128

    key = jax.random.PRNGKey(0)
    kp, kx1, kx2 = jax.random.split(key, 3)
    w1, b1, w2, b2 = init_valuenet_params(kp, state_dim, hidden_dim)

    w1_np, b1_np = np.asarray(w1), np.asarray(b1)
    w2_np, b2_np = np.asarray(w2), np.asarray(b2)

    def ref_fn(xx):
        h = np.maximum(np.asarray(xx, np.float32) @ w1_np.T + b1_np, 0.0)
        return h @ w2_np.T + b2_np

    # Single-tile path: B=8 is padded to one 128-lane output tile.
    x_small = jax.random.normal(kx1, (8, state_dim), jnp.float32)
    out_small = jax.block_until_ready(value_net_forward(x_small, w1, b1, w2, b2))
    assert out_small.shape == (8, 1)
    np.testing.assert_allclose(np.asarray(out_small), ref_fn(x_small),
                               atol=1e-4, rtol=1e-4)

    # Multi-tile path with a ragged last tile (300 = 2*128 + 44).
    x_big = jax.random.normal(kx2, (300, state_dim), jnp.float32)
    out_big = jax.block_until_ready(
        value_net_forward(x_big, w1, b1, w2, b2, batch_tile=128))
    assert out_big.shape == (300, 1)
    np.testing.assert_allclose(np.asarray(out_big), ref_fn(x_big),
                               atol=1e-4, rtol=1e-4)

    print("KERNEL_OK")
</pallas_src>

<mosaic_0001>
module attributes {stable_mosaic.version = 11 : i64} {
  func.func @valuenet_kernel(%arg0: i32, %arg1: memref<2x128xf32, #tpu.memory_space<vmem>>, %arg2: memref<128x2xf32, #tpu.memory_space<vmem>>, %arg3: memref<128x1xf32, #tpu.memory_space<vmem>>, %arg4: memref<1x128xf32, #tpu.memory_space<vmem>>, %arg5: memref<1x1xf32, #tpu.memory_space<smem>>, %arg6: memref<1x128xf32, #tpu.memory_space<vmem>>) attributes {dimension_semantics = [#tpu.dimension_semantics<parallel>], iteration_bounds = array<i64: 1>, scalar_prefetch = 0 : i64, scratch_operands = 0 : i64, tpu.core_type = #tpu.core_type<tc>, window_params = [{transform_indices = @transform_0, window_bounds = array<i64: 2, 128>}, {pipeline_mode = #tpu.pipeline_mode<synchronous>, transform_indices = @transform_1, window_bounds = array<i64: 128, 2>}, {pipeline_mode = #tpu.pipeline_mode<synchronous>, transform_indices = @transform_2, window_bounds = array<i64: 128, 1>}, {pipeline_mode = #tpu.pipeline_mode<synchronous>, transform_indices = @transform_3, window_bounds = array<i64: 1, 128>}, {transform_indices = @transform_4, window_bounds = array<i64: 1, 1>}, {transform_indices = @transform_5, window_bounds = array<i64: 1, 128>}]} {
    %c0 = arith.constant 0 : index
    %c0_0 = arith.constant 0 : index
    %0 = vector.load %arg1[%c0, %c0_0] : memref<2x128xf32, #tpu.memory_space<vmem>>, vector<2x128xf32>
    %c0_1 = arith.constant 0 : index
    %c0_2 = arith.constant 0 : index
    %1 = vector.load %arg2[%c0_1, %c0_2] : memref<128x2xf32, #tpu.memory_space<vmem>>, vector<128x2xf32>
    %cst = arith.constant dense<0.000000e+00> : vector<128x128xf32>
    %2 = tpu.matmul %1, %0, %cst {dimension_numbers = #tpu.dot_dimension_numbers<[1], [0], [0], [1], [0, 0, 1, 1], [], []>} : vector<128x2xf32>, vector<2x128xf32>, vector<128x128xf32> -> vector<128x128xf32>
    %c0_3 = arith.constant 0 : index
    %c0_4 = arith.constant 0 : index
    %3 = vector.load %arg3[%c0_3, %c0_4] : memref<128x1xf32, #tpu.memory_space<vmem>>, vector<128x1xf32>
    %4 = vector.broadcast %3 : vector<128x1xf32> to vector<128x128xf32>
    %5 = arith.addf %2, %4 : vector<128x128xf32>
    %cst_5 = arith.constant 0.000000e+00 : f32
    %6 = vector.broadcast %cst_5 : f32 to vector<128x128xf32>
    %7 = arith.maximumf %5, %6 : vector<128x128xf32>
    %c0_6 = arith.constant 0 : index
    %c0_7 = arith.constant 0 : index
    %8 = vector.load %arg4[%c0_6, %c0_7] : memref<1x128xf32, #tpu.memory_space<vmem>>, vector<1x128xf32>
    %cst_8 = arith.constant dense<0.000000e+00> : vector<1x128xf32>
    %9 = tpu.matmul %8, %7, %cst_8 {dimension_numbers = #tpu.dot_dimension_numbers<[1], [0], [0], [1], [0, 0, 1, 1], [], []>} : vector<1x128xf32>, vector<128x128xf32>, vector<1x128xf32> -> vector<1x128xf32>
    %c0_9 = arith.constant 0 : index
    %c0_10 = arith.constant 0 : index
    %10 = memref.load %arg5[%c0_9, %c0_10] : memref<1x1xf32, #tpu.memory_space<smem>>
    %11 = vector.broadcast %10 : f32 to vector<1x128xf32>
    %12 = arith.addf %9, %11 : vector<1x128xf32>
    %c0_11 = arith.constant 0 : index
    %c0_12 = arith.constant 0 : index
    %13 = vector.load %arg6[%c0_11, %c0_12] : memref<1x128xf32, #tpu.memory_space<vmem>>, vector<1x128xf32>
    tpu.vector_store %arg6[%c0_11, %c0_12], %12 {strides = array<i32>} : memref<1x128xf32, #tpu.memory_space<vmem>>, vector<1x128xf32>,
    return
  }
  func.func @transform_0(%arg0: i32) -> (i32, i32) {
    %c0_i32 = arith.constant 0 : i32
    %c0_i32_0 = arith.constant 0 : i32
    return %c0_i32, %arg0 : i32, i32
  }
  func.func @transform_1(%arg0: i32) -> (i32, i32) {
    %c0_i32 = arith.constant 0 : i32
    %c0_i32_0 = arith.constant 0 : i32
    %c0_i32_1 = arith.constant 0 : i32
    return %c0_i32, %c0_i32_0 : i32, i32
  }
  func.func @transform_2(%arg0: i32) -> (i32, i32) {
    %c0_i32 = arith.constant 0 : i32
    %c0_i32_0 = arith.constant 0 : i32
    %c0_i32_1 = arith.constant 0 : i32
    return %c0_i32, %c0_i32_0 : i32, i32
  }
  func.func @transform_3(%arg0: i32) -> (i32, i32) {
    %c0_i32 = arith.constant 0 : i32
    %c0_i32_0 = arith.constant 0 : i32
    %c0_i32_1 = arith.constant 0 : i32
    return %c0_i32, %c0_i32_0 : i32, i32
  }
  func.func @transform_4(%arg0: i32) -> (i32, i32) {
    %c0_i32 = arith.constant 0 : i32
    %c0_i32_0 = arith.constant 0 : i32
    %c0_i32_1 = arith.constant 0 : i32
    return %c0_i32, %c0_i32_0 : i32, i32
  }
  func.func @transform_5(%arg0: i32) -> (i32, i32) {
    %c0_i32 = arith.constant 0 : i32
    %c0_i32_0 = arith.constant 0 : i32
    return %c0_i32, %arg0 : i32, i32
  }
}

</mosaic_0001>

<bundles_post_ra>
// kernel: tpu_custom_call.1
= control target key start
LH: loop header
LB: loop body
LE: loop exit
PB: predicated region body
PF: predicated region fallthrough
CT: control target
= control target key end

     0   :  { %vm184_vm0 = vcmask 1041408   ;;  %vm135_vm1 = vcmask 15360   ;;  %v604_v4 = vmov 0   ;;  %s780_s0 = inlined_call_operand.vmem [shape: f32[2,8], index: 0, kind: input, shape index: {}]   ;;  %s781_s1 = inlined_call_operand.vmem [shape: f32[128,2], index: 1, kind: input, shape index: {}]   ;;  %s782_s2 = inlined_call_operand.vmem [shape: f32[128,1], index: 2, kind: input, shape index: {}]   ;;  %s783_s3 = inlined_call_operand.vmem [shape: f32[1,128], index: 3, kind: input, shape index: {}]   ;;  %s784_s4 = inlined_call_operand.<no memory space> [shape: f32[1,1], index: 4, kind: input, shape index: {}]   ;;  %s785_s5 = inlined_call_operand.hbm [shape: f32[1,128], index: 5, kind: output, shape index: {}]  }
   0x1   :  { %v22_v0 = vld [vmem:[%s780_s0] sm:$0x3]  ;;  %v24_v2 = vld [vmem:[%s781_s1 + $0x8] sm:$0xff]  ;;  %v25_v3 = vld [vmem:[%s781_s1 + $0x10] sm:$0xff]  ;;  %578 = vset.pattern.permute.xlu0 %v604_v4  ;;  %579 = vset.pattern.permute.xlu1 %v604_v4 }
   0x2   :  { %v23_v1 = vld [vmem:[%s781_s1] sm:$0xff]  ;;  %488 = vmatprep.subr.msk.mxu0 %vm184_vm0, %v22_v0  ;;  %v26_v5 = vld [vmem:[%s781_s1 + $0x18] sm:$0xff]  ;;  %v41_v8 = vld [vmem:[%s782_s2 + $0x10] sm:$0xff] }
   0x3   :  { %490 = vmatprep.mubr.msk.f32.mxu0 %vm135_vm1, %v23_v1  ;;  %489 = vmatpush3.msk.msra.mxu0 %vm184_vm0, %v22_v0  ;;  %v27_v6 = vld [vmem:[%s781_s1 + $0x20] sm:$0xff]  ;;  %v40_v9 = vld [vmem:[%s782_s2 + $0x8] sm:$0xff]  ;;  %v42_v11 = vld [vmem:[%s782_s2 + $0x18] sm:$0xff] }
   0x4   :  { %491 = vmatmul.mubr.msk.f32.vlgmr.msra.gmra.mrb[0].mxu0 %vm135_vm1, %v24_v2  ;;  %v39_v7 = vld [vmem:[%s782_s2] sm:$0xff]  ;;  %67 = vperm.xlu1 %579, %v41_v8   ;;  %v28_v10 = vld [vmem:[%s781_s1 + $0x28] sm:$0xff]  ;;  %v29_v12 = vld [vmem:[%s781_s1 + $0x30] sm:$0xff] }
   0x5   :  { %493 = vmatprep.mubr.msk.f32.mxu0 %vm135_vm1, %v25_v3  ;;  %57 = vperm.xlu0 %578, %v39_v7   ;;  %v43_v13 = vld [vmem:[%s782_s2 + $0x20] sm:$0xff] }
   0x8   :  { %494 = vmatmul.mubr.msk.f32.gmra.mrb[2].mxu0 %vm135_vm1, %v26_v5  ;;  %72 = vperm.xlu1 %579, %v42_v11  }
   0x9   :  { %496 = vmatprep.mubr.msk.f32.mxu0 %vm135_vm1, %v27_v6  ;;  %62 = vperm.xlu0 %578, %v40_v9  }
   0xc   :  { %497 = vmatmul.mubr.msk.f32.gmra.mrb[4].mxu0 %vm135_vm1, %v28_v10 }
   0xd   :  { %11 = vsyncpa [#allocation4], 0  ;;  %499 = vmatprep.mubr.msk.f32.mxu0 %vm135_vm1, %v29_v12  ;;  %v30_v14 = vld [vmem:[%s781_s1 + $0x38] sm:$0xff]  ;;  %v44_v15 = vld [vmem:[%s782_s2 + $0x28] sm:$0xff]  ;;  %77 = vperm.xlu0 %578, %v43_v13   ;;  %v605_v34 = vmov 0.0|0.0   ;;  %vm606_vm2 = vmmov 0  }
   0xe   :  { %v31_v16 = vld [vmem:[%s781_s1 + $0x40] sm:$0xff]  ;;  %82 = vperm.xlu1 %579, %v44_v15   ;;  %v45_v17 = vld [vmem:[%s782_s2 + $0x30] sm:$0xff]  ;;  %v32_v18 = vld [vmem:[%s781_s1 + $0x48] sm:$0xff]  ;;  %549 = vmatprep.subr.bf16.mxu1 %v605_v34  ;;  %v607_v35 = vmov 0.0   ;;  %s608_s8 = smov [#allocation3]  }
   0xf   :  { %v46_v19 = vld [vmem:[%s782_s2 + $0x38] sm:$0xff]  ;;  %v33_v20 = vld [vmem:[%s781_s1 + $0x50] sm:$0xff]  ;;  %v47_v21 = vld [vmem:[%s782_s2 + $0x40] sm:$0xff]  ;;  %546 = vmatprep.mubr.msk.f32.mxu1 %vm606_vm2, %v607_v35  ;;  %s429_s9 = sshll.u32 %s608_s8, 4  ;;  %s430_s9 = int_to_ptr.vmem [resolvable:$true] %s429_s9 }
  0x10   :  { %500 = vmatmul.mubr.msk.f32.gmra.mrb[6].mxu0 %vm135_vm1, %v30_v14  ;;  %v34_v22 = vld [vmem:[%s781_s1 + $0x58] sm:$0xff]  ;;  %v48_v23 = vld [vmem:[%s782_s2 + $0x48] sm:$0xff]  ;;  %v35_v24 = vld [vmem:[%s781_s1 + $0x60] sm:$0xff]  ;;  %s580_s10 = scalar_lea.vmem %s430_s9, 16  ;;  %s584_s11 = scalar_lea.vmem %s430_s9, 32 }
  0x11   :  { %502 = vmatprep.mubr.msk.f32.mxu0 %vm135_vm1, %v31_v16  ;;  %87 = vperm.xlu0 %578, %v45_v17   ;;  %v49_v25 = vld [vmem:[%s782_s2 + $0x50] sm:$0xff]  ;;  %v36_v26 = vld [vmem:[%s781_s1 + $0x68] sm:$0xff]  ;;  %v50_v27 = vld [vmem:[%s782_s2 + $0x58] sm:$0xff]  ;;  %p581_p0 = scmp.ne.s32.totalorder %s430_s9, %s580_s10  ;;  %p585_p1 = scmp.lt.s32.totalorder %s430_s9, %s430_s9 }
  0x12   :  { %92 = vperm.xlu1 %579, %v46_v19   ;;  %v37_v28 = vld [vmem:[%s781_s1 + $0x70] sm:$0xff]  ;;  %v51_v29 = vld [vmem:[%s782_s2 + $0x60] sm:$0xff]  ;;  %v38_v30 = vld [vmem:[%s781_s1 + $0x78] sm:$0xff]  ;;  %p586_p2 = scmp.lt.s32.totalorder %s584_s11, %s580_s10 }
  0x13   :  { %v52_v31 = vld [vmem:[%s782_s2 + $0x68] sm:$0xff]  ;;  %v53_v32 = vld [vmem:[%s782_s2 + $0x70] sm:$0xff]  ;;  %v54_v33 = vld [vmem:[%s782_s2 + $0x78] sm:$0xff] }
  0x14   :  { %503 = vmatmul.mubr.msk.f32.gmra.mrb[8].mxu0 %vm135_vm1, %v32_v18  ;;  %p587_p3 = por %p586_p2, %p585_p1 }
  0x15   :  { %505 = vmatprep.mubr.msk.f32.mxu0 %vm135_vm1, %v33_v20  ;;  %97 = vperm.xlu0 %578, %v47_v21  }
  0x16   :  { %102 = vperm.xlu1 %579, %v48_v23   ;;  %p588_p4 = pnand %p587_p3, %p581_p0 }
  0x18   :  { %506 = vmatmul.mubr.msk.f32.gmra.mrb[10].mxu0 %vm135_vm1, %v34_v22 }
  0x19   :  { %508 = vmatprep.mubr.msk.f32.mxu0 %vm135_vm1, %v35_v24  ;;  %107 = vperm.xlu0 %578, %v49_v25  }
  0x1a   :  { %112 = vperm.xlu1 %579, %v50_v27  }
  0x1c   :  { %509 = vmatmul.mubr.msk.f32.gmra.mrb[12].mxu0 %vm135_vm1, %v36_v26 }
  0x1d   :  { %511 = vmatprep.mubr.msk.f32.mxu0 %vm135_vm1, %v37_v28  ;;  %117 = vperm.xlu0 %578, %v51_v29  }
  0x1e   :  { %122 = vperm.xlu1 %579, %v52_v31  }
  0x20   :  { %512 = vmatmul.mubr.msk.f32.gmra.mrb[14].mxu0 %vm135_vm1, %v38_v30 }
  0x21   :  { %127 = vperm.xlu0 %578, %v53_v32  }
  0x22   :  { %132 = vperm.xlu1 %579, %v54_v33  }
  0x83   :  { %v68_v36 = vpop.permute.xlu1 %67 }
  0x84   :  { %v58_v37 = vpop.permute.xlu0 %57 }
  0x87   :  { %v73_v38 = vpop.permute.xlu1 %72 }
  0x88   :  { %v63_v39 = vpop.permute.xlu0 %62 }
  0x8c   :  { %v78_v41 = vpop.permute.xlu0 %77 }
  0x8d   :  { %v83_v40 = vpop.permute.xlu1 %82 }
  0x90   :  { %v88_v50 = vpop.permute.xlu0 %87 }
  0x91   :  { %v93_v47 = vpop.permute.xlu1 %92 }
  0x94   :  { %v98_v63 = vpop.permute.xlu0 %97 }
  0x95   :  { %v103_v60 = vpop.permute.xlu1 %102 }
  0x98   :  { %v108_v11 = vpop.permute.xlu0 %107 }
  0x99   :  { %v113_v8 = vpop.permute.xlu1 %112 }
  0x9c   :  { %v118_v24 = vpop.permute.xlu0 %117 }
  0x9d   :  { %v123_v21 = vpop.permute.xlu1 %122 }
  0xa1   :  { %v133_v33 = vpop.permute.xlu1 %132 }
  0xd7   :  { %v492_v42 = vpop.f32.mrb[0].mxu0 }
  0xd8   :  { %v260_v43 = vadd.f32 %v492_v42, %v63_v39  ;;  %v254_v44 = vpop.f32.mrb[1].mxu0 }
  0xd9   :  { %v255_v45 = vadd.f32 %v254_v44, %v58_v37  ;;  %v128_v37 = vpop.permute.xlu0 %127 }
  0xda   :  { %v334_v46 = vmax.f32 %v260_v43, 0.0 }
  0xdb   :  { %v333_v48 = vmax.f32 %v255_v45, 0.0  ;;  %v495_v49 = vpop.f32.mrb[2].mxu0  ;;  %v349_v45 = vld [vmem:[%s783_s3] sm:$0x1] }
  0xdc   :  { %v270_v51 = vadd.f32 %v495_v49, %v73_v38  ;;  %v264_v52 = vpop.f32.mrb[3].mxu0 }
  0xdd   :  { %v265_v53 = vadd.f32 %v264_v52, %v68_v36  ;;  %v550_v54 = vpack.c.bf16 %v334_v46, %v333_v48  ;;  %v351_v46 = vstv %s784_s4 }
  0xde   :  { %v336_v55 = vmax.f32 %v270_v51, 0.0 }
  0xdf   :  { %v335_v56 = vmax.f32 %v265_v53, 0.0  ;;  %v498_v57 = vpop.f32.mrb[4].mxu0  ;;  %551 = vmatpush3.bf16.msra.mxu1 %v550_v54 }
  0xe0   :  { %v280_v58 = vadd.f32 %v498_v57, %v83_v40  ;;  %v274_v59 = vpop.f32.mrb[5].mxu0  ;;  %552 = vmatprep.subr.bf16.mxu1 %v605_v34 }
  0xe1   :  { %v553_v61 = vpack.c.bf16 %v336_v55, %v335_v56  ;;  %v275_v62 = vadd.f32 %v274_v59, %v78_v41 }
  0xe2   :  { %v338_v0 = vmax.f32 %v280_v58, 0.0 }
  0xe3   :  { %v337_v1 = vmax.f32 %v275_v62, 0.0  ;;  %v501_v2 = vpop.f32.mrb[6].mxu0  ;;  %554 = vmatpush3.bf16.msra.mxu1 %v553_v61 }
  0xe4   :  { %v290_v3 = vadd.f32 %v501_v2, %v93_v47  ;;  %v284_v4 = vpop.f32.mrb[7].mxu0  ;;  %555 = vmatprep.subr.bf16.mxu1 %v605_v34 }
  0xe5   :  { %v556_v5 = vpack.c.bf16 %v338_v0, %v337_v1  ;;  %v285_v6 = vadd.f32 %v284_v4, %v88_v50 }
  0xe6   :  { %v340_v7 = vmax.f32 %v290_v3, 0.0 }
  0xe7   :  { %v339_v9 = vmax.f32 %v285_v6, 0.0  ;;  %v504_v10 = vpop.f32.mrb[8].mxu0  ;;  %557 = vmatpush3.bf16.msra.mxu1 %v556_v5 }
  0xe8   :  { %v300_v12 = vadd.f32 %v504_v10, %v103_v60  ;;  %v294_v13 = vpop.f32.mrb[9].mxu0  ;;  %558 = vmatprep.subr.bf16.mxu1 %v605_v34 }
  0xe9   :  { %v559_v14 = vpack.c.bf16 %v340_v7, %v339_v9  ;;  %v295_v15 = vadd.f32 %v294_v13, %v98_v63 }
  0xea   :  { %v342_v16 = vmax.f32 %v300_v12, 0.0 }
  0xeb   :  { %v341_v17 = vmax.f32 %v295_v15, 0.0  ;;  %v507_v18 = vpop.f32.mrb[10].mxu0  ;;  %560 = vmatpush3.bf16.msra.mxu1 %v559_v14 }
  0xec   :  { %v310_v19 = vadd.f32 %v507_v18, %v113_v8  ;;  %v304_v20 = vpop.f32.mrb[11].mxu0  ;;  %561 = vmatprep.subr.bf16.mxu1 %v605_v34 }
  0xed   :  { %v562_v22 = vpack.c.bf16 %v342_v16, %v341_v17  ;;  %v305_v23 = vadd.f32 %v304_v20, %v108_v11 }
  0xee   :  { %v344_v25 = vmax.f32 %v310_v19, 0.0 }
  0xef   :  { %v343_v26 = vmax.f32 %v305_v23, 0.0  ;;  %v510_v27 = vpop.f32.mrb[12].mxu0  ;;  %563 = vmatpush3.bf16.msra.mxu1 %v562_v22 }
  0xf0   :  { %v320_v28 = vadd.f32 %v510_v27, %v123_v21  ;;  %v314_v29 = vpop.f32.mrb[13].mxu0  ;;  %564 = vmatprep.subr.bf16.mxu1 %v605_v34 }
  0xf1   :  { %v565_v30 = vpack.c.bf16 %v344_v25, %v343_v26  ;;  %v315_v31 = vadd.f32 %v314_v29, %v118_v24 }
  0xf2   :  { %v346_v32 = vmax.f32 %v320_v28, 0.0 }
  0xf3   :  { %v345_v35 = vmax.f32 %v315_v31, 0.0  ;;  %v513_v36 = vpop.f32.mrb[14].mxu0  ;;  %566 = vmatpush3.bf16.msra.mxu1 %v565_v30 }
  0xf4   :  { %v330_v38 = vadd.f32 %v513_v36, %v133_v33  ;;  %v324_v39 = vpop.f32.mrb[15].mxu0  ;;  %567 = vmatprep.subr.bf16.mxu1 %v605_v34 }
  0xf5   :  { %v568_v40 = vpack.c.bf16 %v346_v32, %v345_v35  ;;  %v325_v41 = vadd.f32 %v324_v39, %v128_v37 }
  0xf6   :  { %v348_v42 = vmax.f32 %v330_v38, 0.0 }
  0xf7   :  { %v347_v43 = vmax.f32 %v325_v41, 0.0  ;;  %569 = vmatpush3.bf16.msra.mxu1 %v568_v40 }
  0xf8   :  { %570 = vmatprep.subr.bf16.mxu1 %v605_v34 }
  0xf9   :  { %v571_v44 = vpack.c.bf16 %v348_v42, %v347_v43 }
  0xfb   :  { %572 = vmatpush3.bf16.msra.mxu1 %v571_v44 }
  0xfe   :  { %547 = vmatmul.mubr.f32.vlgmr.msra.gmra.mrb[0].mxu1 %v349_v45 }
 0x1d1   :  { %v418_v47 = vpop.f32.mrb[0].mxu1 }
 0x1d2   :  { %v419_v48 = vadd.f32 %v418_v47, %v351_v46  ;;  %v548_v49 = vpop.f32.mrb[1].mxu1 }
 0x1d4   :  { %422 = vst [vmem:[#allocation3] sm:$0x1] %v419_v48 }
 0x1d5   :  { %591 = shalt.err (!%p588_p4)
}
 0x1d6   :  { %s592_s13 = scalar_lea.hbm %s785_s5, 16 }
 0x1d7   :  { %p593_p5 = scmp.ne.s32.totalorder %s785_s5, %s592_s13  ;;  %p596_p6 = scmp.lt.u32.totalorder %s592_s13, %s785_s5 }
 0x1d9   :  { %p598_p7 = pnand %p596_p6, %p593_p5 }
 0x1db   :  { %601 = shalt.err (!%p598_p7)
}
 0x1dc   :  { %432 = dma.vmem_to_hbm [thread:$0]  %s430_s9, 16, %s785_s5, [#allocation4]  }
 0x1dd   :  { %602 = dma.done.wait [#allocation4], 16  }
 0x1de   :  { %603 = vsyncadd [#allocation4], 4294967280 }
 0x1df   :  { %436 = vsyncpa [#allocation4], 1 }

</bundles_post_ra>
